<compile_context>
chip_gen: v6e
topology: v6e:2x2x1
jax: 0.10.0
libtpu: 0.0.40
codegen_flags: <defaults>
</compile_context>

<pallas_src>
import math
from functools import partial

import jax
import jax.numpy as jnp
from jax.experimental import pallas as pl
from jax.experimental.pallas import tpu as pltpu

# --- LIParameters defaults (norse) ---
TAU_SYN_INV = 1.0 / 5e-3   # 200.0
TAU_MEM_INV = 1.0 / 1e-2   # 100.0
V_LEAK = 0.0
DT = 0.001

_LANE = 128
_TARGET_BLOCK_ELEMS = 256 * 1024   # ~1 MiB f32 per operand per block (pipeline-friendly)


def _li_ff_kernel_state(x_ref, v_ref, i_ref, v_out_ref, i_out_ref, *, a, b, v_leak):
    """General step with an explicit (v, i) state. Pure VPU elementwise work."""
    x = x_ref[...].astype(jnp.float32)
    v = v_ref[...].astype(jnp.float32)
    i = i_ref[...].astype(jnp.float32)

    i_jump = i + x
    v_new = v + a * ((v_leak - v) + i_jump)   # a = dt * tau_mem_inv
    i_dec = i_jump * b                        # b = 1 - dt * tau_syn_inv

    v_out_ref[...] = v_new.astype(v_out_ref.dtype)
    i_out_ref[...] = i_dec.astype(i_out_ref.dtype)


def _li_ff_kernel_nostate(x_ref, v_out_ref, i_out_ref, *, a, b, v_leak):
    """state=None fast path: v = v_leak (scalar), i = 0 folded into the math."""
    x = x_ref[...].astype(jnp.float32)
    v_out_ref[...] = (v_leak + a * x).astype(v_out_ref.dtype)
    i_out_ref[...] = (b * x).astype(i_out_ref.dtype)


def _work_shape(shape):
    """Pick a 2-D working view: lane-dense [total/128, 128] if possible (free
    reshape), else [prod(leading), last_dim]."""
    total = int(math.prod(shape)) if len(shape) > 0 else 1
    if total >= _LANE and total % _LANE == 0:
        return total // _LANE, _LANE
    if len(shape) >= 2:
        return total // shape[-1], shape[-1]
    return 1, max(total, 1)


def _row_tile(m, n):
    """Rows per block: multiple of 8, bounded so each operand block is ~1 MiB."""
    if m <= 8:
        return m
    tb = _TARGET_BLOCK_ELEMS // max(n, 1)
    tb = min(tb, m)
    tb = max(8, (tb // 8) * 8)
    return tb


def li_feed_forward_cell(x, state=None, *, dt=DT, tau_syn_inv=TAU_SYN_INV,
                         tau_mem_inv=TAU_MEM_INV, v_leak=V_LEAK):
    """Forward of norse LIFeedForwardCell. Returns (v_new, (v_new, i_new))."""
    orig_shape = x.shape
    dtype = x.dtype
    m, n = _work_shape(orig_shape)
    x2 = x.reshape(m, n)

    a = float(dt * tau_mem_inv)
    b = float(1.0 - dt * tau_syn_inv)
    v_leak = float(v_leak)

    tb = _row_tile(m, n)
    grid = (pl.cdiv(m, tb),)
    blk = pl.BlockSpec((tb, n), lambda r: (r, 0))

    out_shape = (jax.ShapeDtypeStruct((m, n), dtype),
                 jax.ShapeDtypeStruct((m, n), dtype))

    bytes_per_array = m * n * jnp.dtype(dtype).itemsize
    cparams = pltpu.CompilerParams(
        dimension_semantics=("parallel",),
        vmem_limit_bytes=32 << 20,
    )

    if state is None:
        # Default state (v = v_leak scalar, i = 0): never materialized / DMA'd.
        kernel = partial(_li_ff_kernel_nostate, a=a, b=b, v_leak=v_leak)
        cost = pl.CostEstimate(flops=4 * m * n, transcendentals=0,
                               bytes_accessed=3 * bytes_per_array)
        v_new, i_new = pl.pallas_call(
            kernel,
            out_shape=out_shape,
            grid=grid,
            in_specs=[blk],
            out_specs=(blk, blk),
            compiler_params=cparams,
            cost_estimate=cost,
        )(x2)
    else:
        v0, i0 = state
        v0 = jnp.broadcast_to(jnp.asarray(v0, dtype=dtype), orig_shape).reshape(m, n)
        i0 = jnp.broadcast_to(jnp.asarray(i0, dtype=dtype), orig_shape).reshape(m, n)
        kernel = partial(_li_ff_kernel_state, a=a, b=b, v_leak=v_leak)
        cost = pl.CostEstimate(flops=6 * m * n, transcendentals=0,
                               bytes_accessed=5 * bytes_per_array)
        v_new, i_new = pl.pallas_call(
            kernel,
            out_shape=out_shape,
            grid=grid,
            in_specs=[blk, blk, blk],
            out_specs=(blk, blk),
            compiler_params=cparams,
            cost_estimate=cost,
        )(x2, v0, i0)

    v_new = v_new.reshape(orig_shape)
    i_new = i_new.reshape(orig_shape)
    return v_new, (v_new, i_new)


def _reference(x, state, dt=DT, tau_syn_inv=TAU_SYN_INV, tau_mem_inv=TAU_MEM_INV,
               v_leak=V_LEAK):
    """Plain-JAX transcription of norse li_feed_forward_step (exact op order)."""
    if state is None:
        v = jnp.asarray(v_leak, dtype=x.dtype)
        i = jnp.zeros_like(x)
    else:
        v, i = state
    i_jump = i + x
    dv = dt * tau_mem_inv * ((v_leak - v) + i_jump)
    v_new = v + dv
    di = -dt * tau_syn_inv * i_jump
    i_decayed = i_jump + di
    return v_new, i_decayed


if __name__ == "__main__":
    key = jax.random.PRNGKey(0)
    k1, k2, k3, k4 = jax.random.split(key, 4)

    # Case 1: state=None (cold start), typical [batch, hidden] input.
    x1 = jax.random.normal(k1, (2, 32), jnp.float32)
    v1, (v1_s, i1_s) = li_feed_forward_cell(x1)

    # Case 2: explicit state carried from a previous step.
    x2 = jax.random.normal(k2, (4, 64), jnp.float32)
    v0 = jax.random.normal(k3, (4, 64), jnp.float32)
    i0 = jax.random.normal(k4, (4, 64), jnp.float32)
    v2, (v2_s, i2_s) = li_feed_forward_cell(x2, (v0, i0))

    jax.block_until_ready((v1, i1_s, v2, i2_s))

    vr1, ir1 = _reference(x1, None)
    vr2, ir2 = _reference(x2, (v0, i0))

    assert v1.shape == x1.shape and i1_s.shape == x1.shape
    assert v2.shape == x2.shape and i2_s.shape == x2.shape
    assert jnp.allclose(v1, vr1, atol=1e-5, rtol=1e-5)
    assert jnp.allclose(i1_s, ir1, atol=1e-5, rtol=1e-5)
    assert jnp.allclose(v2, vr2, atol=1e-5, rtol=1e-5)
    assert jnp.allclose(i2_s, ir2, atol=1e-5, rtol=1e-5)

    print("KERNEL_OK")
</pallas_src>

<mosaic_0001>
module attributes {stable_mosaic.version = 11 : i64} {
  func.func @_li_ff_kernel_nostate(%arg0: i32, %arg1: memref<2x32xf32, #tpu.memory_space<vmem>>, %arg2: memref<2x32xf32, #tpu.memory_space<vmem>>, %arg3: memref<2x32xf32, #tpu.memory_space<vmem>>) attributes {dimension_semantics = [#tpu.dimension_semantics<parallel>], iteration_bounds = array<i64: 1>, scalar_prefetch = 0 : i64, scratch_operands = 0 : i64, tpu.core_type = #tpu.core_type<tc>, window_params = [{transform_indices = @transform_0, window_bounds = array<i64: 2, 32>}, {transform_indices = @transform_1, window_bounds = array<i64: 2, 32>}, {transform_indices = @transform_2, window_bounds = array<i64: 2, 32>}]} {
    %c0 = arith.constant 0 : index
    %c0_0 = arith.constant 0 : index
    %0 = vector.load %arg1[%c0, %c0_0] : memref<2x32xf32, #tpu.memory_space<vmem>>, vector<2x32xf32>
    %cst = arith.constant 1.000000e-01 : f32
    %1 = vector.broadcast %cst : f32 to vector<2x32xf32>
    %2 = arith.mulf %1, %0 : vector<2x32xf32>
    %cst_1 = arith.constant 0.000000e+00 : f32
    %3 = vector.broadcast %cst_1 : f32 to vector<2x32xf32>
    %4 = arith.addf %3, %2 : vector<2x32xf32>
    %c0_2 = arith.constant 0 : index
    %c0_3 = arith.constant 0 : index
    %5 = vector.load %arg2[%c0_2, %c0_3] : memref<2x32xf32, #tpu.memory_space<vmem>>, vector<2x32xf32>
    tpu.vector_store %arg2[%c0_2, %c0_3], %4 {strides = array<i32>} : memref<2x32xf32, #tpu.memory_space<vmem>>, vector<2x32xf32>,
    %cst_4 = arith.constant 8.000000e-01 : f32
    %6 = vector.broadcast %cst_4 : f32 to vector<2x32xf32>
    %7 = arith.mulf %6, %0 : vector<2x32xf32>
    %c0_5 = arith.constant 0 : index
    %c0_6 = arith.constant 0 : index
    %8 = vector.load %arg3[%c0_5, %c0_6] : memref<2x32xf32, #tpu.memory_space<vmem>>, vector<2x32xf32>
    tpu.vector_store %arg3[%c0_5, %c0_6], %7 {strides = array<i32>} : memref<2x32xf32, #tpu.memory_space<vmem>>, vector<2x32xf32>,
    return
  }
  func.func @transform_0(%arg0: i32) -> (i32, i32) {
    %c0_i32 = arith.constant 0 : i32
    %c0_i32_0 = arith.constant 0 : i32
    return %arg0, %c0_i32 : i32, i32
  }
  func.func @transform_1(%arg0: i32) -> (i32, i32) {
    %c0_i32 = arith.constant 0 : i32
    %c0_i32_0 = arith.constant 0 : i32
    return %arg0, %c0_i32 : i32, i32
  }
  func.func @transform_2(%arg0: i32) -> (i32, i32) {
    %c0_i32 = arith.constant 0 : i32
    %c0_i32_0 = arith.constant 0 : i32
    return %arg0, %c0_i32 : i32, i32
  }
}

</mosaic_0001>

<bundles_post_ra>
// kernel: tpu_custom_call.1
= control target key start
LH: loop header
LB: loop body
LE: loop exit
PB: predicated region body
PF: predicated region fallthrough
CT: control target
= control target key end

     0   :  { %8 = vsyncpa [#allocation3], 0  ;;  %s156_s0 = inlined_call_operand.hbm [shape: f32[2,32], index: 0, kind: input, shape index: {}]   ;;  %s157_s1 = inlined_call_operand.hbm [shape: f32[2,32], index: 1, kind: output, shape index: {0}]   ;;  %s158_s2 = inlined_call_operand.hbm [shape: f32[2,32], index: 2, kind: output, shape index: {1}]  }
   0x1   :  { %9 = vsyncpa [#allocation4], 0 }
   0x2   :  { %10 = vsyncpa [#allocation7], 0  ;;  %s129_s9 = smov [#allocation2]  }
   0x3   :  { %s17_s10 = sshll.u32 %s129_s9, 4  ;;  %s18_s10 = int_to_ptr.vmem [resolvable:$true] %s17_s10 }
   0x4   :  { %s71_s11 = scalar_lea.vmem %s18_s10, 32  ;;  %p76_p1 = scmp.lt.s32.totalorder %s18_s10, %s18_s10 }
   0x5   :  { %p72_p0 = scmp.ne.s32.totalorder %s18_s10, %s71_s11  ;;  %p77_p2 = scmp.lt.s32.totalorder %s71_s11, %s71_s11 }
   0x7   :  { %p78_p3 = por %p77_p2, %p76_p1 }
   0x9   :  { %p79_p4 = pnand %p78_p3, %p72_p0 }
   0xb   :  { %82 = shalt.err (!%p79_p4)
}
   0xc   :  { %20 = dma.hbm_to_vmem [thread:$0]  %s156_s0, 32, %s18_s10, [#allocation3]  }
   0xd   :  { %123 = dma.done.wait [#allocation3], 32  }
   0xe   :  { %124 = vsyncadd [#allocation3], 4294967264  ;;  %s130_s14 = smov [#allocation5]   ;;  %s131_s16 = smov [#allocation6]   ;;  %v24_v0 = vld [vmem:[#allocation2] sm:$0x3] }
   0xf   :  { %s37_s15 = sshll.u32 %s130_s14, 4  ;;  %s47_s17 = sshll.u32 %s131_s16, 4  ;;  %vm27_vm0 = vcmask 254976   ;;  %v25_v1 = vmul.f32 0.1, %v24_v0  ;;  %s38_s15 = int_to_ptr.vmem [resolvable:$true] %s37_s15  ;;  %s48_s17 = int_to_ptr.vmem [resolvable:$true] %s47_s17 }
  0x10   :  { %v29_v2 = vmul.f32 0.8, %v24_v0  ;;  %s83_s18 = scalar_lea.vmem %s38_s15, 32  ;;  %p88_p6 = scmp.lt.s32.totalorder %s38_s15, %s38_s15 }
  0x11   :  { %28 = vst.msk [vmem:[#allocation5] sm:$0x3] %vm27_vm0, %v25_v1  ;;  %p84_p5 = scmp.ne.s32.totalorder %s38_s15, %s83_s18  ;;  %p89_p7 = scmp.lt.s32.totalorder %s83_s18, %s83_s18 }
  0x12   :  { %30 = vst.msk [vmem:[#allocation6] sm:$0x3] %vm27_vm0, %v29_v2 }
  0x13   :  { %p90_p8 = por %p89_p7, %p88_p6 }
  0x15   :  { %p91_p9 = pnand %p90_p8, %p84_p5 }
  0x17   :  { %94 = shalt.err (!%p91_p9)
}
  0x18   :  { %40 = dma.vmem_to_hbm [thread:$0]  %s38_s15, 32, %s157_s1, [#allocation4]  }
  0x19   :  { %s103_s20 = scalar_lea.vmem %s48_s17, 32  ;;  %p108_p11 = scmp.lt.s32.totalorder %s48_s17, %s48_s17 }
  0x1a   :  { %p104_p10 = scmp.ne.s32.totalorder %s48_s17, %s103_s20  ;;  %p109_p12 = scmp.lt.s32.totalorder %s103_s20, %s103_s20 }
  0x1c   :  { %p110_p13 = por %p109_p12, %p108_p11 }
  0x1e   :  { %p111_p0 = pnand %p110_p13, %p104_p10 }
  0x20   :  { %114 = shalt.err (!%p111_p0)
}
  0x21   :  { %50 = dma.vmem_to_hbm [thread:$0]  %s48_s17, 32, %s158_s2, [#allocation7]  }
  0x22   :  { %125 = dma.done.wait [#allocation4], 32  }
  0x23   :  { %126 = vsyncadd [#allocation4], 4294967264 }
  0x24   :  { %127 = dma.done.wait [#allocation7], 32  }
  0x25   :  { %128 = vsyncadd [#allocation7], 4294967264 }
  0x26   :  { %57 = vsyncpa [#allocation3], 1 }
  0x27   :  { %58 = vsyncpa [#allocation4], 1 }
  0x28   :  { %59 = vsyncpa [#allocation7], 1 }

</bundles_post_ra>
